<compile_context>
chip_gen: v7x
topology: tpu7x:2x2x1
jax: 0.10.0
libtpu: 0.0.40
codegen_flags: <defaults>
</compile_context>

<pallas_src>
import functools

import jax
import jax.numpy as jnp
from jax.experimental import pallas as pl
from jax.experimental.pallas import tpu as pltpu


def _dflv2_kernel(exp_ref, logits_ref, tgt_ref, out_ref, *, n_rows, tile_rows):
    # exp_ref:    (1,)     f32 SMEM  -- gamma * current_epoch / total_epoch
    # logits_ref: (TN, C)  VMEM, native dtype (f32/bf16/...)
    # tgt_ref:    (TN, 1)  i32 VMEM
    # out_ref:    (8, 128) f32 VMEM  -- this tile's partial sum at [0, 0]
    i = pl.program_id(0)

    x = logits_ref[...].astype(jnp.float32)            # (TN, C) upcast on VPU
    tgt = tgt_ref[...]                                  # (TN, 1) int32

    # Numerically-stable log-sum-exp.
    m = jnp.max(x, axis=-1, keepdims=True)              # (TN, 1)
    z = x - m                                           # (TN, C)
    ez = jnp.exp(z)                                     # (TN, C)
    sum_ez = jnp.sum(ez, axis=-1, keepdims=True)        # (TN, 1)

    cls = jax.lax.broadcasted_iota(jnp.int32, x.shape, 1)
    z_t = jnp.sum(jnp.where(cls == tgt, z, 0.0), axis=-1, keepdims=True)

    ce = jnp.log(sum_ez) - z_t                           # per-sample CE (>= 0)
    pt = jnp.exp(-ce)                                    # softmax prob of target

    expnt = exp_ref[0]                                   # gamma * progress
    base = jnp.maximum(1.0 - pt, 0.0)
    mod = jnp.power(base, expnt)
    # Guard 0**0 -> 1 (PyTorch semantics when current_epoch == 0 and ce == 0).
    mod = jnp.where((base == 0.0) & (expnt == 0.0), jnp.float32(1.0), mod)
    dfl = ce + mod * ce                                  # (TN, 1)

    # Mask the ragged final tile so padded rows never pollute the reduction.
    row = i * tile_rows + jax.lax.broadcasted_iota(jnp.int32, dfl.shape, 0)
    tile_sum = jnp.sum(jnp.where(row < n_rows, dfl, 0.0))

    # Lane-dense (8, 128) output block: tile_sum at [0, 0], zeros elsewhere.
    r8 = jax.lax.broadcasted_iota(jnp.int32, (8, 128), 0)
    c128 = jax.lax.broadcasted_iota(jnp.int32, (8, 128), 1)
    out_ref[...] = jnp.where((r8 == 0) & (c128 == 0), tile_sum, jnp.float32(0.0))


def _pick_tile_rows(n_cols, itemsize):
    # Lane dim pads to 128 in VMEM; per-tile working set ~ double-buffered
    # native-dtype input block + ~5 live f32 (TN, c_pad) temporaries.
    # Budget kept well under the scoped-VMEM defaults of v5e(16M)/v6e(32M)/v7x(32M).
    c_pad = max(128, ((n_cols + 127) // 128) * 128)
    budget = 12 * 1024 * 1024
    per_row = c_pad * (2 * itemsize + 5 * 4)
    tn = budget // max(per_row, 1)
    return int(min(4096, max(8, (tn // 8) * 8)))


def dflv2_loss(logits, targets, current_epoch, total_epoch, *,
               alpha=0.25, gamma=2.0, reduction="mean", tile_rows=None):
    del alpha  # stored but unused by the reference forward()
    assert reduction in ("mean", "sum"), "reduction='none' not supported here"
    n, c = logits.shape
    tgt2d = targets.astype(jnp.int32).reshape(n, 1)

    # Fold gamma * progress into a single SMEM scalar (works for traced epochs).
    exponent = (jnp.asarray(gamma, jnp.float32)
                * jnp.asarray(current_epoch, jnp.float32)
                / jnp.asarray(total_epoch, jnp.float32)).reshape(1)

    if tile_rows is None:
        tile_rows = _pick_tile_rows(c, jnp.dtype(logits.dtype).itemsize)
    if tile_rows >= n:
        tile_rows = n                                  # single full block
    else:
        tile_rows = max(8, (tile_rows // 8) * 8)       # sublane-aligned tiles
    num_tiles = -(-n // tile_rows)

    kernel = functools.partial(_dflv2_kernel, n_rows=n, tile_rows=tile_rows)

    partials = pl.pallas_call(
        kernel,
        out_shape=jax.ShapeDtypeStruct((8 * num_tiles, 128), jnp.float32),
        grid=(num_tiles,),
        in_specs=[
            pl.BlockSpec(memory_space=pltpu.MemorySpace.SMEM),   # exponent scalar
            pl.BlockSpec((tile_rows, c), lambda i: (i, 0)),      # logits (native dtype)
            pl.BlockSpec((tile_rows, 1), lambda i: (i, 0)),      # targets
        ],
        out_specs=pl.BlockSpec((8, 128), lambda i: (i, 0)),      # per-tile partials
        compiler_params=pltpu.CompilerParams(
            dimension_semantics=("parallel",),                   # no cross-step carry
            vmem_limit_bytes=32 * 1024 * 1024,
        ),
    )(exponent, logits, tgt2d)

    total = jnp.sum(partials)        # zeros everywhere except [8*i, 0]
    if reduction == "mean":
        return total * jnp.float32(1.0 / n)
    return total


def _dflv2_ref(logits, targets, current_epoch, total_epoch, gamma=2.0,
               reduction="mean"):
    # Pure-JAX reference mirroring the PyTorch forward.
    logp = jax.nn.log_softmax(logits.astype(jnp.float32), axis=-1)
    ce = -jnp.take_along_axis(logp, targets[:, None].astype(jnp.int32), axis=-1)[:, 0]
    pt = jnp.exp(-ce)
    progress = float(current_epoch) / float(total_epoch)
    dfl = ce + (1.0 - pt) ** (gamma * progress) * ce
    return dfl.mean() if reduction == "mean" else dfl.sum()


if __name__ == "__main__":
    key = jax.random.PRNGKey(0)
    k1, k2 = jax.random.split(key)

    N, C = 50, 37       # deliberately ragged vs the 8-row tile to exercise masking
    logits_f32 = jax.random.normal(k1, (N, C), dtype=jnp.float32)
    targets = jax.random.randint(k2, (N,), 0, C, dtype=jnp.int32)
    cur, tot = 2, 10

    # 1) multi-tile path with a ragged final tile (masking + per-tile partials).
    loss = jax.block_until_ready(dflv2_loss(logits_f32, targets, cur, tot, tile_rows=8))
    ref = _dflv2_ref(logits_f32, targets, cur, tot)
    assert jnp.allclose(loss, ref, atol=1e-5, rtol=1e-5), (loss, ref)

    # 2) auto tile size (single block here) + 'sum' reduction.
    loss_sum = jax.block_until_ready(dflv2_loss(logits_f32, targets, cur, tot,
                                                reduction="sum"))
    ref_sum = _dflv2_ref(logits_f32, targets, cur, tot, reduction="sum")
    assert jnp.allclose(loss_sum, ref_sum, atol=1e-4, rtol=1e-5), (loss_sum, ref_sum)

    # 3) bf16 logits streamed in native dtype (half the HBM bytes), upcast in-kernel.
    logits_bf16 = logits_f32.astype(jnp.bfloat16)
    loss_bf16 = jax.block_until_ready(dflv2_loss(logits_bf16, targets, cur, tot,
                                                 tile_rows=8))
    ref_bf16 = _dflv2_ref(logits_bf16, targets, cur, tot)
    assert jnp.allclose(loss_bf16, ref_bf16, atol=1e-4, rtol=1e-4), (loss_bf16, ref_bf16)

    # 4) current_epoch == 0 exercises the 0**0 guard (PyTorch: (1-pt)**0 == 1).
    loss_e0 = jax.block_until_ready(dflv2_loss(logits_f32, targets, 0, tot, tile_rows=8))
    ref_e0 = _dflv2_ref(logits_f32, targets, 0, tot)
    assert jnp.allclose(loss_e0, ref_e0, atol=1e-5, rtol=1e-5), (loss_e0, ref_e0)

    print("KERNEL_OK")
</pallas_src>

<mosaic_0001>
module attributes {stable_mosaic.version = 11 : i64} {
  func.func @_dflv2_kernel(%arg0: i32, %arg1: memref<1xf32, #tpu.memory_space<smem>>, %arg2: memref<8x37xf32, #tpu.memory_space<vmem>>, %arg3: memref<8x1xi32, #tpu.memory_space<vmem>>, %arg4: memref<8x128xf32, #tpu.memory_space<vmem>>) attributes {dimension_semantics = [#tpu.dimension_semantics<parallel>], iteration_bounds = array<i64: 7>, scalar_prefetch = 0 : i64, scratch_operands = 0 : i64, tpu.core_type = #tpu.core_type<tc>, window_params = [{transform_indices = @transform_0, window_bounds = array<i64: 1>}, {transform_indices = @transform_1, window_bounds = array<i64: 8, 37>}, {transform_indices = @transform_2, window_bounds = array<i64: 8, 1>}, {transform_indices = @transform_3, window_bounds = array<i64: 8, 128>}]} {
    %c0 = arith.constant 0 : index
    %c0_0 = arith.constant 0 : index
    %0 = vector.load %arg2[%c0, %c0_0] : memref<8x37xf32, #tpu.memory_space<vmem>>, vector<8x37xf32>
    %c0_1 = arith.constant 0 : index
    %c0_2 = arith.constant 0 : index
    %1 = vector.load %arg3[%c0_1, %c0_2] : memref<8x1xi32, #tpu.memory_space<vmem>>, vector<8x1xi32>
    %cst = arith.constant dense<0xFF800000> : vector<8xf32>
    %2 = vector.multi_reduction <maximumf>, %0, %cst [1] : vector<8x37xf32> to vector<8xf32>
    %3 = vector.shape_cast %2 : vector<8xf32> to vector<8x1xf32>
    %4 = vector.broadcast %3 : vector<8x1xf32> to vector<8x37xf32>
    %5 = arith.subf %0, %4 : vector<8x37xf32>
    %6 = math.exp %5 : vector<8x37xf32>
    %cst_3 = arith.constant dense<0.000000e+00> : vector<8xf32>
    %7 = vector.multi_reduction <add>, %6, %cst_3 [1] : vector<8x37xf32> to vector<8xf32>
    %8 = vector.shape_cast %7 : vector<8xf32> to vector<8x1xf32>
    %9 = tpu.iota {dimensions = array<i32: 1>} : vector<8x37xi32>
    %10 = vector.broadcast %1 : vector<8x1xi32> to vector<8x37xi32>
    %11 = arith.cmpi eq, %9, %10 : vector<8x37xi32>
    %cst_4 = arith.constant 0.000000e+00 : f32
    %12 = vector.broadcast %cst_4 : f32 to vector<8x37xf32>
    %13 = arith.select %11, %5, %12 : vector<8x37xi1>, vector<8x37xf32>
    %cst_5 = arith.constant dense<0.000000e+00> : vector<8xf32>
    %14 = vector.multi_reduction <add>, %13, %cst_5 [1] : vector<8x37xf32> to vector<8xf32>
    %15 = vector.shape_cast %14 : vector<8xf32> to vector<8x1xf32>
    %16 = math.log %8 : vector<8x1xf32>
    %17 = arith.subf %16, %15 : vector<8x1xf32>
    %cst_6 = arith.constant 0.000000e+00 : f32
    %18 = vector.broadcast %cst_6 : f32 to vector<8x1xf32>
    %19 = arith.subf %18, %17 : vector<8x1xf32>
    %20 = math.exp %19 : vector<8x1xf32>
    %c0_7 = arith.constant 0 : index
    %21 = memref.load %arg1[%c0_7] : memref<1xf32, #tpu.memory_space<smem>>
    %cst_8 = arith.constant 1.000000e+00 : f32
    %22 = vector.broadcast %cst_8 : f32 to vector<8x1xf32>
    %23 = arith.subf %22, %20 : vector<8x1xf32>
    %cst_9 = arith.constant 0.000000e+00 : f32
    %24 = vector.broadcast %cst_9 : f32 to vector<8x1xf32>
    %25 = arith.maximumf %23, %24 : vector<8x1xf32>
    %26 = vector.broadcast %21 : f32 to vector<8x1xf32>
    %27 = math.powf %25, %26 : vector<8x1xf32>
    %cst_10 = arith.constant 0.000000e+00 : f32
    %28 = vector.broadcast %cst_10 : f32 to vector<8x1xf32>
    %29 = arith.cmpf oeq, %25, %28 : vector<8x1xf32>
    %cst_11 = arith.constant 0.000000e+00 : f32
    %30 = arith.cmpf oeq, %21, %cst_11 : f32
    %31 = vector.broadcast %30 : i1 to vector<8x1xi1>
    %32 = arith.andi %29, %31 : vector<8x1xi1>
    %cst_12 = arith.constant 1.000000e+00 : f32
    %33 = vector.broadcast %cst_12 : f32 to vector<8x1xf32>
    %34 = arith.select %32, %33, %27 : vector<8x1xi1>, vector<8x1xf32>
    %35 = arith.mulf %34, %17 : vector<8x1xf32>
    %36 = arith.addf %17, %35 : vector<8x1xf32>
    %c8_i32 = arith.constant 8 : i32
    %37 = arith.muli %arg0, %c8_i32 : i32
    %38 = tpu.iota {dimensions = array<i32: 0>} : vector<8x1xi32>
    %39 = vector.broadcast %37 : i32 to vector<8x1xi32>
    %40 = arith.addi %39, %38 : vector<8x1xi32>
    %c50_i32 = arith.constant 50 : i32
    %41 = vector.broadcast %c50_i32 : i32 to vector<8x1xi32>
    %42 = arith.cmpi slt, %40, %41 : vector<8x1xi32>
    %cst_13 = arith.constant 0.000000e+00 : f32
    %43 = vector.broadcast %cst_13 : f32 to vector<8x1xf32>
    %44 = arith.select %42, %36, %43 : vector<8x1xi1>, vector<8x1xf32>
    %45 = vector.shape_cast %44 : vector<8x1xf32> to vector<1x8x1xf32>
    %cst_14 = arith.constant dense<0.000000e+00> : vector<1xf32>
    %46 = vector.multi_reduction <add>, %45, %cst_14 [1, 2] : vector<1x8x1xf32> to vector<1xf32>
    %47 = vector.shape_cast %46 : vector<1xf32> to vector<1x1x1xf32>
    %48 = vector.extract %47[0, 0, 0] : f32 from vector<1x1x1xf32>
    %49 = tpu.iota {dimensions = array<i32: 0>} : vector<8x128xi32>
    %50 = tpu.iota {dimensions = array<i32: 1>} : vector<8x128xi32>
    %c0_i32 = arith.constant 0 : i32
    %51 = vector.broadcast %c0_i32 : i32 to vector<8x128xi32>
    %52 = arith.cmpi eq, %49, %51 : vector<8x128xi32>
    %c0_i32_15 = arith.constant 0 : i32
    %53 = vector.broadcast %c0_i32_15 : i32 to vector<8x128xi32>
    %54 = arith.cmpi eq, %50, %53 : vector<8x128xi32>
    %55 = arith.andi %52, %54 : vector<8x128xi1>
    %cst_16 = arith.constant 0.000000e+00 : f32
    %56 = vector.broadcast %48 : f32 to vector<8x128xf32>
    %57 = vector.broadcast %cst_16 : f32 to vector<8x128xf32>
    %58 = arith.select %55, %56, %57 : vector<8x128xi1>, vector<8x128xf32>
    %c0_17 = arith.constant 0 : index
    %c0_18 = arith.constant 0 : index
    %59 = vector.load %arg4[%c0_17, %c0_18] : memref<8x128xf32, #tpu.memory_space<vmem>>, vector<8x128xf32>
    tpu.vector_store %arg4[%c0_17, %c0_18], %58 {strides = array<i32>} : memref<8x128xf32, #tpu.memory_space<vmem>>, vector<8x128xf32>,
    return
  }
  func.func @transform_0(%arg0: i32) -> i32 {
    %c0_i32 = arith.constant 0 : i32
    %c0_i32_0 = arith.constant 0 : i32
    return %c0_i32 : i32
  }
  func.func @transform_1(%arg0: i32) -> (i32, i32) {
    %c0_i32 = arith.constant 0 : i32
    %c0_i32_0 = arith.constant 0 : i32
    return %arg0, %c0_i32 : i32, i32
  }
  func.func @transform_2(%arg0: i32) -> (i32, i32) {
    %c0_i32 = arith.constant 0 : i32
    %c0_i32_0 = arith.constant 0 : i32
    return %arg0, %c0_i32 : i32, i32
  }
  func.func @transform_3(%arg0: i32) -> (i32, i32) {
    %c0_i32 = arith.constant 0 : i32
    %c0_i32_0 = arith.constant 0 : i32
    return %arg0, %c0_i32 : i32, i32
  }
}

</mosaic_0001>

<bundles_post_ra>
// kernel: tpu_custom_call.1
= control target key start
LH: loop header
LB: loop body
LE: loop exit
PB: predicated region body
PF: predicated region fallthrough
CT: control target
= control target key end

     0   :  { %s722_s0 = inlined_call_operand.<no memory space> [shape: f32[1], index: 0, kind: input, shape index: {}]   ;;  %s723_s1 = inlined_call_operand.vmem [shape: f32[50,37], index: 1, kind: input, shape index: {}]   ;;  %s724_s2 = inlined_call_operand.vmem [shape: s32[50,1], index: 2, kind: input, shape index: {}]   ;;  %s725_s3 = inlined_call_operand.hbm [shape: f32[56,128], index: 3, kind: output, shape index: {}]  }
   0x1   :  { %8 = sst [smem:[#allocation2]] %s722_s0 }
   0x2   :  { %9 = vsyncpa [#allocation4], 0 }
   0x3   :  { %11 = vsyncpa [#allocation4 + $0x1], 0  ;;  %s543_s14 = smov 0   ;;  %s545_s15 = smov 0  }
   0x4   :  { %s547_s16 = smov 0   ;;  %s549_s17 = smov 0  }
   0x5 LB: > { %s564_s0 = sadd.s32 4294967295, %s515_s17   ;;  %s335_s18 = sadd.s32 4294967294, %s515_s17   ;;  %s515_s17 = sphi %s549_s17, %s735_s17   ;;  %s511_s16 = sphi %s547_s16, %s734_s16   ;;  %s507_s15 = sphi %s545_s15, %s733_s15   ;;  %s503_s14 = sphi %s543_s14, %s732_s14  }
   0x6   : > { %s568_s19 = sadd.s32 1, %s515_s17   ;;  %s97_s20 = sadd.s32 1, %s511_s16 }
   0x7   : > { %s94_s21 = ssub.s32 %s515_s17, %s568_s19  ;;  %p107_p0 = scmp.ne.s32.totalorder %s511_s16, %s507_s15 }
   0x8   : > { %p95_p1 = scmp.eq.s32.totalorder %s94_s21, 0  ;;  %p108_p2 = scmp.eq.s32.totalorder %s564_s0, 6 }
   0x9   : > { %p113_p3 = scmp.ne.s32.totalorder %s507_s15, %s503_s14  ;;  %p114_p4 = scmp.eq.s32.totalorder %s335_s18, 6 }
   0xa   : > { %s579_s22 = scalar_select %p95_p1, %s511_s16, %s97_s20  }
   0xb   : > { %p581_p5 = por %p108_p2, %p107_p0  ;;  %p585_p6 = por %p114_p4, %p113_p3 }
   0xc   : > { %p338_p7 = scmp.ge.s32.totalorder %s515_s17, 1  ;;  %p149_p8 = scmp.lt.s32.totalorder %s515_s17, 8 }
   0xe   : > { %p150_p9 = pnand %p338_p7, %p149_p8 }
   0xf   : > { %p176_p10 = scmp.lt.s32.totalorder (!%p150_p9), %s564_s0, 6  ;;  %v517_v0 = vmov (!%p150_p9), 0   ;;  %vm186_vm0 = vcmask (!%p150_p9), 302080   ;;  %v196_v7 = vlaneseq (!%p150_p9)  ;;  %s610_s6 = sld [smem:[#allocation2]] (!%p150_p9)  ;;  %v518_v34 = vmov (!%p150_p9), 2139095040  }
  0x10   : > { %153 = sbr.rel (%p150_p9) target bundleno = 626 (0x272), region = 32  ;;  %442 = vset.pattern.permute.xlu0 (!%p150_p9), %v517_v0  ;;  %s342_s8 = sshll.u32 (!%p150_p9), %s564_s0, 3 }
  0x11   : > { %v602_v8 = vand.u32 (!%p150_p9), 127, %v196_v7  ;;  %v228_v48 = vshrl.u32 (!%p150_p9), %v196_v7, 7  ;;  %v229_v51 = vstv (!%p150_p9), %s342_s8  ;;  %s173_s9 = sand.u32 (!%p150_p9), 1, %s507_s15   ;;  %s344_s11 = sshll.u32 (!%p150_p9), %s564_s0, 7 }
  0x12   : > { %s339_s10 = sshll.u32 (!%p150_p9), %s173_s9, 3 }
  0x13   : > { %v230_v55 = vadd.s32 (!%p150_p9), %v229_v51, %v228_v48  ;;  %s175_s12 = scalar_lea.vmem (!%p150_p9), [#allocation3], %s339_s10 }
  0x14   : > { %s264_s13 = sshll.u32 (!%p150_p9), %s175_s12, 4  ;;  %s682_s13 = int_to_ptr.vmem [resolvable:$true] %s264_s13 }
  0x15   : > { %v613_v23 = vstv (!%p150_p9), %s610_s6  ;;  %p218_p11 = scmp.eq.f32.partialorder (!%p150_p9), %s610_s6, 0.0  ;;  %s453_s27 = scalar_lea.vmem (!%p150_p9), %s682_s13, 128 }
  0x16   : > { %v351_v25 = vand.u32 (!%p150_p9), 2147483647, %v613_v23  ;;  %v356_v28 = vtrunc.f32 (!%p150_p9), %v613_v23  ;;  %vm355_vm7 = vcmp.lt.f32.partialorder (!%p150_p9), %v613_v23, 0  ;;  %p454_p12 = scmp.ne.s32.totalorder (!%p150_p9), %s682_s13, %s453_s27 }
  0x17   : > { %s177_s25 = scalar_select %p176_p10, %s564_s0, 6  ;;  %v387_v35 = vsel %vm355_vm7, 0, %v518_v34  ;;  %v375_v38 = vsel %vm355_vm7, 2139095040, %v517_v0 }
  0x18   : > { %v360_v27 = vtrunc.f32 %v351_v25  ;;  %vm352_vm2 = vcmp.eq.f32.partialorder %v351_v25, 2139095040  ;;  %vm357_vm3 = vcmp.ne.f32.partialorder %v613_v23, %v356_v28  ;;  %vm359_vm9 = vcmp.lt.f32.partialorder %v351_v25, 1266679808  ;;  %s219_s7 = scalar_select %p218_p11, 1, 0 }
  0x19   : > { %s340_s26 = sshll.u32 %s177_s25, 3  ;;  %vm622_vm4 = vmor %vm357_vm3, %vm352_vm2  ;;  %v388_v37 = vxor.u32 2147483648, %v387_v35  ;;  %s680_s25 = scalar_lea.hbm %s725_s3, %s344_s11 }
  0x1a   : > { %s179_s29 = scalar_lea.vmem %s723_s1, %s340_s26  ;;  %s183_s5 = scalar_lea.vmem %s724_s2, %s340_s26  ;;  %v361_v29 = vcvt.f32.s32 %v360_v27  ;;  %vm364_vm6 = vmneg %vm622_vm4  ;;  %v220_v45 = vstv %s219_s7 }
  0x1b   : > { %v184_v1 = vld [vmem:[%s179_s29] sm:$0xff]  ;;  %s251_s26 = scalar_lea.sflag [#allocation4], %s173_s9  ;;  %p455_p13 = pnand %p454_p12, %p581_p5 }
  0x1c   : > { %v187_v2 = vsel %vm186_vm0, %v184_v1, -inf  ;;  %v185_v3 = vld [vmem:[%s183_s5] sm:$0xff]  ;;  %v362_v31 = vand.u32 1, %v361_v29  ;;  %s519_s0 = smov [#allocation3]  }
  0x1d   : > { %188 = vmax.xlane.f32.xlu0 %v187_v2  ;;  %p456_p0 = pneg %p455_p13  ;;  %s457_s28 = sshll.u32 %s519_s0, 4  ;;  %s458_s28 = int_to_ptr.vmem [resolvable:$false] %s457_s28 }
  0x1e   : > { %vm363_vm5 = vcmp.eq.s32.totalorder %v362_v31, 1  ;;  %s459_s29 = scalar_lea.vmem %s458_s28, 256  ;;  %p460_p1 = scmp.lt.s32.totalorder %s682_s13, %s458_s28 }
  0x1f   : > { %vm365_vm10 = vmand %vm363_vm5, %vm364_vm6  ;;  %vm353_vm5 = vcmp.eq.f32.partialorder %v613_v23, 0  ;;  %vm393_vm6 = vcmp.ne.f32.partialorder %v613_v23, %v613_v23  ;;  %p461_p2 = scmp.lt.s32.totalorder %s459_s29, %s453_s27 }
  0x20   : > { %vm632_vm13 = vmand %vm359_vm9, %vm365_vm10 }
  0x21   : > { %v389_v43 = vsel %vm632_vm13, %v388_v37, %v387_v35  ;;  %p462_p3 = por %p461_p2, %p460_p1 }
  0x23   : > { %p463_p4 = pnand %p462_p3, %p456_p0 }
  0x33   : > { %199 = vperm.xlu0 %442, %v185_v3  }
  0xaa   : > { %v189_v4 = vpop.xlane.xlu0 %188 }
  0xab   : > { %v190_v5 = vsub.f32 %v184_v1, %v189_v4 }
  0xad   : > { %v191_v6 = vmul.f32 1.442695, %v190_v5 }
  0xaf   : > { %443 = vpow2.f32 %v191_v6 }
  0xb2   : > { %v200_v9 = vpop.permute.xlu0 %199 }
  0xb3   : > { %vm201_vm1 = vcmp.eq.s32.totalorder %v602_v8, %v200_v9 }
  0xb4   : > { %v202_v12 = vsel %vm201_vm1, %v190_v5, 0.0 }
  0xb5   : > { %v203_v13 = vsel %vm186_vm0, %v202_v12, 0.0 }
  0xb9   : > { %v444_v10 = vpop.eup %443 }
  0xba   : > { %v193_v11 = vsel %vm186_vm0, %v444_v10, 0.0 }
  0xbb   : > { %194 = vadd.xlane.f32.xlu1 %v193_v11 }
  0xbf   : > { %204 = vadd.xlane.f32.xlu1 %v203_v13 }
 0x148   : > { %v195_v14 = vpop.xlane.xlu1 %194 }
 0x149   : > { %445 = vlog2.f32 %v195_v14 }
 0x14c   : > { %v205_v17 = vpop.xlane.xlu1 %204 }
 0x153   : > { %v446_v15 = vpop.eup %445 }
 0x154   : > { %v207_v16 = vmul.f32 0.6931472, %v446_v15 }
 0x156   : > { %v607_v18 = vsub.f32 %v207_v16, %v205_v17 }
 0x158   : > { %v209_v19 = vsub.f32 0.0, %v607_v18 }
 0x15a   : > { %v210_v20 = vmul.f32 1.442695, %v209_v19 }
 0x15c   : > { %447 = vpow2.f32 %v210_v20 }
 0x166   : > { %v448_v21 = vpop.eup %447 }
 0x167   : > { %v213_v22 = vsub.f32 1.0, %v448_v21 }
 0x169   : > { %v615_v24 = vmax.f32 %v213_v22, 0.0 }
 0x16b   : > { %v347_v26 = vand.u32 2147483647, %v615_v24  ;;  %vm368_vm11 = vcmp.eq.f32.partialorder %v615_v24, 0  ;;  %vm367_vm14 = vcmp.lt.f32.partialorder %v615_v24, 0  ;;  %vm370_vm3 = vcmp.lt.s32.totalorder %v615_v24, 0 }
 0x16c   : > { %vm380_vm15 = vmand %vm355_vm7, %vm368_vm11  ;;  %vm369_vm9 = vcmp.eq.f32.partialorder %v615_v24, 1065353216  ;;  %v390_v50 = vsel %vm367_vm14, %v389_v43, %v387_v35 }
 0x16d   : > { %449 = vlog2.f32 %v347_v26  ;;  %vm371_vm8 = vcmp.gt.f32.partialorder %v347_v26, 1065353216  ;;  %vm373_vm1 = vmand %vm367_vm14, %vm622_vm4  ;;  %vm372_vm10 = vcmp.eq.f32.partialorder %v347_v26, 2139095040  ;;  %vm231_vm14 = vcmp.lt.s32.totalorder %v230_v55, 50 }
 0x16e   : > { %vm381_vm12 = vmxor %vm355_vm7, %vm371_vm8  ;;  %vm384_vm7 = vcmp.eq.f32.partialorder %v615_v24, 3212836864  ;;  %vm392_vm8 = vcmp.ne.f32.partialorder %v615_v24, %v615_v24 }
 0x16f   : > { %vm382_vm0 = vmor %vm380_vm15, %vm381_vm12  ;;  %vm221_vm12 = vcmp.eq.s32.totalorder %v220_v45, 1  ;;  %vm217_vm15 = vcmp.eq.f32.partialorder %v615_v24, 0.0 }
 0x170   : > { %v383_v42 = vsel %vm382_vm0, 2139095040, %v517_v0  ;;  %vm377_vm4 = vmand %vm370_vm3, %vm632_vm13  ;;  %vm244_vm3 = vcmp.eq.s32.totalorder %v228_v48, 0 }
 0x171   : > { %v385_v47 = vsel %vm384_vm7, 1065353216, %v383_v42  ;;  %vm394_vm13 = vmor %vm392_vm8, %vm393_vm6 }
 0x172   : > { %vm396_vm0 = vmor %vm369_vm9, %vm353_vm5  ;;  %vm245_vm5 = vcmp.eq.s32.totalorder %v602_v8, 0 }
 0x173   : > { %vm246_vm6 = vmand %vm244_vm3, %vm245_vm5 }
 0x177   : > { %v450_v30 = vpop.eup %449 }
 0x178   : > { %v349_v33 = vmul.f32 %v450_v30, %v613_v23 }
 0x17a   : > { %451 = vpow2.f32 %v349_v33 }
 0x184   : > { %v452_v39 = vpop.eup %451 }
 0x185   : > { %v374_v40 = vsel %vm373_vm1, 2143289344, %v452_v39  ;;  %vm233_vm1 = vcmask 7168  }
 0x186   : > { %v376_v41 = vsel %vm368_vm11, %v375_v38, %v374_v40  ;;  %vm354_vm11 = vcmp.eq.f32.partialorder %v613_v23, 1065353216 }
 0x187   : > { %v378_v44 = vxor.u32 2147483648, %v376_v41 }
 0x189   : > { %v379_v46 = vsel %vm377_vm4, %v378_v44, %v376_v41 }
 0x18a   : > { %v386_v49 = vsel %vm352_vm2, %v385_v47, %v379_v46  ;;  %vm222_vm2 = vmand %vm217_vm15, %vm221_vm12 }
 0x18b   : > { %v391_v52 = vsel %vm372_vm10, %v390_v50, %v386_v49 }
 0x18c   : > { %v395_v53 = vsel %vm394_vm13, 2143289344, %v391_v52 }
 0x18d   : > { %v397_v54 = vsel %vm396_vm0, 1065353216, %v395_v53 }
 0x18e   : > { %v398_v56 = vsel %vm354_vm11, %v615_v24, %v397_v54 }
 0x18f   : > { %v223_v57 = vsel %vm222_vm2, 1.0, %v398_v56 }
 0x190   : > { %v224_v58 = vmul.f32 %v223_v57, %v607_v18 }
 0x192   : > { %v225_v59 = vadd.f32 %v224_v58, %v607_v18 }
 0x194   : > { %v232_v60 = vsel %vm231_vm14, %v225_v59, 0.0 }
 0x195   : > { %v234_v61 = vsel %vm233_vm1, %v232_v60, 0.0 }
 0x196   : > { %235 = vadd.xlane.f32.xlu1 %v234_v61 }
 0x223   : > { %v236_v62 = vpop.xlane.xlu1 %235 }
 0x224   : > { %v237_v63 = vrot.slane %v236_v62, 4 }
 0x226   : > { %v238_v0 = vadd.f32 %v237_v63, %v236_v62 }
 0x228   : > { %v239_v1 = vrot.slane %v238_v0, 2 }
 0x22a   : > { %v240_v2 = vadd.f32 %v239_v1, %v238_v0 }
 0x22c   : > { %v241_v3 = vrot.slane %v240_v2, 1 }
 0x22e   : > { %v242_v4 = vadd.f32 %v241_v3, %v240_v2 }
 0x230   : > { %399 = vpush %v242_v4 }
 0x261   : > { %s400_s18 = spop %399 }
 0x262   : > { %v247_v5 = vstv %s400_s18 }
 0x263   : > { %v248_v6 = vsel %vm246_vm6, %v247_v5, 0.0 }
 0x264   : > { %249 = vst [vmem:[%s175_s12] sm:$0xff] %v248_v6 }
 0x265   : > { %466 = shalt.err (!%p463_p4)
}
 0x266   : > { %s467_s30 = scalar_lea.hbm %s680_s25, 128  ;;  %s471_s6 = scalar_lea.hbm %s725_s3, 896 }
 0x267   : > { %p468_p7 = scmp.ne.s32.totalorder %s680_s25, %s467_s30  ;;  %p472_p10 = scmp.lt.u32.totalorder %s680_s25, %s725_s3 }
 0x268   : > { %p473_p11 = scmp.lt.u32.totalorder %s471_s6, %s467_s30  ;;  %p475_p13 = scmp.lt.u32.totalorder %s467_s30, %s680_s25 }
 0x269   : > { %p469_p8 = pnand %p468_p7, %p581_p5 }
 0x26a   : > { %p474_p12 = por %p473_p11, %p472_p10 }
 0x26b   : > { %p470_p9 = pneg %p469_p8 }
 0x26c   : > { %p476_p0 = por %p475_p13, %p474_p12 }
 0x26e   : > { %p477_p1 = pnand %p476_p0, %p470_p9 }
 0x270   : > { %480 = shalt.err (!%p477_p1)
}
 0x271   : > { %401 = dma.vmem_to_hbm [thread:$0]  (%p581_p5), %s682_s13, 128, %s680_s25, %s251_s26  }
 0x272 PF: > { %p407_p2 = scmp.ge.s32.totalorder %s515_s17, 2  ;;  %s276_s9 = sand.u32 1, %s503_s14  }
 0x273   : > { %s277_s10 = scalar_lea.sflag [#allocation4], %s276_s9 }
 0x274   : > { %p404_p3 = pnand %p407_p2, %p585_p6 }
 0x276   : > { %498 = dma.done.wait (!%p404_p3), %s277_s10, 128  }
 0x277   : > { %500 = vsyncadd (!%p404_p3), %s277_s10, 4294967168  ;;  %p14_p4 = scmp.ge.s32.totalorder %s568_s19, 9   ;;  %s732_s14 = smov %s507_s15 }
 0x278   : > { %s733_s15 = smov %s511_s16  ;;  %s734_s16 = smov %s579_s22 }
 0x279   : > { %s735_s17 = smov %s568_s19  ;;  %16 = sbr.rel (!%p14_p4) target bundleno = 5 (0x5), region = 70 }
 0x280   :  { %282 = vsyncpa [#allocation4], 1 }
 0x281   :  { %284 = vsyncpa [#allocation4 + $0x1], 1 }

</bundles_post_ra>
